<compile_context>
chip_gen: v7x
topology: tpu7x:2x2x1
jax: 0.10.0
libtpu: 0.0.40
codegen_flags: <defaults>
</compile_context>

<pallas_src>
import numpy as np
import jax
import jax.numpy as jnp
from jax.experimental import pallas as pl
from jax.experimental.pallas import tpu as pltpu

CHANNELS = [4, 8, 16, 32, 64]
KSIZE = 4
STRIDE = 2
L_IN = 46  # sequence length that collapses to 1 after the 4 conv layers


def _seq_lens():
    lens = [L_IN]
    for _ in range(len(CHANNELS) - 1):
        lens.append((lens[-1] - KSIZE) // STRIDE + 1)
    return lens  # [46, 22, 10, 4, 1]


def conv1d_to_dense(w, L_in, input_channel_major):
    """w: (C_out, C_in, K) -> dense (C_in*L_in, C_out*L_out) matrix (exact).

    input_channel_major=True : input rows indexed ci*L_in + pos   (NCL flat)
    input_channel_major=False: input rows indexed pos*C_in + ci   (NLC flat)
    Output columns are always channel-major: co*L_out + t.
    """
    C_out, C_in, K = w.shape
    L_out = (L_in - KSIZE) // STRIDE + 1
    W = np.zeros((C_in * L_in, C_out * L_out), dtype=np.float32)
    w = np.asarray(w, np.float32)
    for co in range(C_out):
        for ci in range(C_in):
            for t in range(L_out):
                for k in range(KSIZE):
                    pos = STRIDE * t + k
                    row = ci * L_in + pos if input_channel_major else pos * C_in + ci
                    W[row, co * L_out + t] = w[co, ci, k]
    return W


# ---------------- parameters (deterministic, PyTorch-style uniform init) ------
def init_params(key):
    params = {"conv_w": [], "conv_b": []}
    keys = jax.random.split(key, 2 * (len(CHANNELS) - 1) + 2)
    ki = 0
    for i in range(len(CHANNELS) - 1):
        cin, cout = CHANNELS[i], CHANNELS[i + 1]
        bound = 1.0 / np.sqrt(cin * KSIZE)
        w = jax.random.uniform(keys[ki], (cout, cin, KSIZE), jnp.float32, -bound, bound); ki += 1
        b = jax.random.uniform(keys[ki], (cout,), jnp.float32, -bound, bound); ki += 1
        params["conv_w"].append(w)
        params["conv_b"].append(b)
    bound = 1.0 / np.sqrt(CHANNELS[-1])
    params["lin_w"] = jax.random.uniform(keys[ki], (1, CHANNELS[-1]), jnp.float32, -bound, bound); ki += 1
    params["lin_b"] = jax.random.uniform(keys[ki], (1,), jnp.float32, -bound, bound)
    return params


def densify_params(params):
    """Dense conv weights in bf16 (first layer absorbs the NLC->NCL transpose)."""
    lens = _seq_lens()
    dense = []
    for i in range(len(CHANNELS) - 1):
        W = conv1d_to_dense(np.asarray(params["conv_w"][i]), lens[i],
                            input_channel_major=(i != 0))
        b = np.repeat(np.asarray(params["conv_b"][i], np.float32), lens[i + 1])[None, :]
        dense.append((jnp.asarray(W, jnp.bfloat16), jnp.asarray(b, jnp.float32)))
    Wl_row = jnp.asarray(np.asarray(params["lin_w"], np.float32), jnp.bfloat16)  # (1, 64)
    bl = jnp.asarray(np.asarray(params["lin_b"], np.float32)[None, :])           # (1, 1)
    return dense, Wl_row, bl


# ---------------- Pallas kernel: whole ManNet as fused matmul chain ----------
def _mannet_kernel(x_ref, w1, b1, w2, b2, w3, b3, w4, b4, wl, bl, o_ref):
    h = x_ref[...]                                              # bf16 (TILE_N, 184)
    # 4x (Conv1d as dense matmul) + ReLU, unrolled at trace time.
    for w, b in ((w1, b1), (w2, b2), (w3, b3), (w4, b4)):
        acc = jnp.dot(h, w[...], preferred_element_type=jnp.float32)  # bf16 MXU, f32 acc
        h = jnp.maximum(acc + b[...], 0.0).astype(jnp.bfloat16)
    # squeeze(L=1) is implicit in the flat layout; final Linear(64 -> 1),
    # emitted lane-dense as a (1, TILE_N) row (single tiny MXU pass).
    logit = jnp.einsum("ck,nk->cn", wl[...], h,
                       preferred_element_type=jnp.float32) + bl[...]
    o_ref[...] = logit[None]                                    # (1, 1, TILE_N)


def _round_up(x, m):
    return (x + m - 1) // m * m


def mannet_forward(cl_cat_nlc, dense, Wl_row, bl, tile_n=512):
    """cl_cat_nlc: (N, 46, 4) float NLC -> (N,) logits.

    The NLC->NCL transpose of the PyTorch model is folded into the first dense
    conv weight, so the input is reshaped to (N, 184) directly.
    """
    N = cl_cat_nlc.shape[0]
    feat = CHANNELS[0] * L_IN
    tile_n = min(tile_n, _round_up(max(N, 8), 8))
    num_tiles = -(-N // tile_n)
    n_pad = num_tiles * tile_n

    x = cl_cat_nlc.reshape(N, feat).astype(jnp.bfloat16)
    if n_pad != N:
        x = jnp.pad(x, ((0, n_pad - N), (0, 0)))

    weights = []
    for W, b in dense:
        weights += [W, b]
    weights += [Wl_row, bl]

    x_spec = pl.BlockSpec((tile_n, feat), lambda i: (i, 0))
    # full-shape blocks with constant index_map -> DMA'd once, VMEM-resident
    w_specs = [pl.BlockSpec(w.shape, lambda i: (0, 0)) for w in weights]
    out_spec = pl.BlockSpec((1, 1, tile_n), lambda i: (i, 0, 0))

    flops_per_row = 2 * sum(W.shape[0] * W.shape[1] for W, _ in dense) + 2 * CHANNELS[-1]
    weight_bytes = sum(int(np.prod(w.shape)) * w.dtype.itemsize for w in weights)
    cost = pl.CostEstimate(
        flops=int(flops_per_row * n_pad),
        transcendentals=0,
        bytes_accessed=int(n_pad * (feat * 2 + 4) + weight_bytes),
    )

    out3 = pl.pallas_call(
        _mannet_kernel,
        out_shape=jax.ShapeDtypeStruct((num_tiles, 1, tile_n), jnp.float32),
        grid=(num_tiles,),
        in_specs=[x_spec] + w_specs,
        out_specs=out_spec,
        compiler_params=pltpu.CompilerParams(
            dimension_semantics=("parallel",),
            vmem_limit_bytes=32 * 1024 * 1024,
        ),
        cost_estimate=cost,
    )(x, *weights)
    return out3.reshape(-1)[:N]


# ---------------- full module forward (index bookkeeping is glue) ------------
def maneuver_pred_forward(feats, cl_cands_mod, dense, Wl_row, bl):
    # actor_gather: only actor_idcs are used downstream
    actor_idcs, count = [], 0
    for f in feats:
        n = f.shape[0]
        actor_idcs.append(jnp.arange(count, count + n))
        count += n
    target_idcs = [idcs[1] for idcs in actor_idcs]

    # cl_gather (no transpose: absorbed into W1)
    cl_list, group_sizes = [], []
    for scene in cl_cands_mod:
        for c in scene:
            cl_list.append(c)
            group_sizes.append(int(c.shape[0]))
    cl_cat = jnp.concatenate(cl_list, axis=0)                      # (N, 46, 4) NLC

    logits = mannet_forward(cl_cat, dense, Wl_row, bl)             # (N,)

    # out_reform: per-vehicle softmax over ragged candidate groups, done as a
    # single segmented softmax instead of one gather+softmax per vehicle.
    num_veh = len(group_sizes)
    seg_ids = jnp.asarray(np.repeat(np.arange(num_veh), group_sizes), jnp.int32)
    seg_max = jax.ops.segment_max(logits, seg_ids, num_segments=num_veh)
    e = jnp.exp(logits - seg_max[seg_ids])
    seg_sum = jax.ops.segment_sum(e, seg_ids, num_segments=num_veh)
    probs = e / seg_sum[seg_ids]
    splits = list(np.cumsum(group_sizes)[:-1])
    out = jnp.split(probs, splits) if splits else [probs]
    return out, target_idcs


# ---------------- pure-JAX reference for correctness check -------------------
def mannet_reference(cl_cat_ncl, params):
    h = cl_cat_ncl
    for w, b in zip(params["conv_w"], params["conv_b"]):
        h = jax.lax.conv_general_dilated(
            h, w, window_strides=(STRIDE,), padding="VALID",
            dimension_numbers=("NCH", "OIH", "NCH"))
        h = jnp.maximum(h + b[None, :, None], 0.0)
    h = h[:, :, 0]
    return h @ params["lin_w"].T + params["lin_b"]


if __name__ == "__main__":
    key = jax.random.PRNGKey(0)
    pkey, dkey = jax.random.split(key)
    params = init_params(pkey)
    dense, Wl_row, bl = densify_params(params)

    # Small synthetic "data" dict contents:
    #   feats: list per scene of (num_actors, 20, 3)
    #   cl_cands_mod: list per scene of list per actor of (n_cands, 46, 4)
    dkeys = jax.random.split(dkey, 16)
    feats = [jax.random.normal(dkeys[0], (3, 20, 3), jnp.float32),
             jax.random.normal(dkeys[1], (2, 20, 3), jnp.float32)]
    cands_per_actor = [[2, 3, 2], [3, 2]]
    cl_cands_mod, ki = [], 2
    for per_scene in cands_per_actor:
        scene = []
        for n in per_scene:
            scene.append(jax.random.normal(dkeys[ki], (n, L_IN, 4), jnp.float32))
            ki += 1
        cl_cands_mod.append(scene)

    out, target_idcs = maneuver_pred_forward(feats, cl_cands_mod, dense, Wl_row, bl)
    out = [jax.block_until_ready(o) for o in out]
    _ = [jax.block_until_ready(t) for t in target_idcs]

    # sanity check kernel vs pure-JAX conv reference (f32 reference, bf16 kernel)
    cl_list = [c for scene in cl_cands_mod for c in scene]
    cl_cat = jnp.concatenate(cl_list, 0).astype(jnp.float32)       # (N, 46, 4)
    ref = mannet_reference(jnp.transpose(cl_cat, (0, 2, 1)), params)  # (N, 1)
    got = mannet_forward(cl_cat, dense, Wl_row, bl)                   # (N,)
    np.testing.assert_allclose(np.asarray(got), np.asarray(ref)[:, 0],
                               rtol=5e-2, atol=5e-2)

    # per-group softmax sums to 1
    for o in out:
        np.testing.assert_allclose(float(jnp.sum(o)), 1.0, rtol=1e-4, atol=1e-4)

    print("KERNEL_OK")
</pallas_src>

<mosaic_0001>
module attributes {stable_mosaic.version = 11 : i64} {
  func.func @_mannet_kernel(%arg0: i32, %arg1: memref<16x184xbf16, #tpu.memory_space<vmem>>, %arg2: memref<184x176xbf16, #tpu.memory_space<vmem>>, %arg3: memref<1x176xf32, #tpu.memory_space<vmem>>, %arg4: memref<176x160xbf16, #tpu.memory_space<vmem>>, %arg5: memref<1x160xf32, #tpu.memory_space<vmem>>, %arg6: memref<160x128xbf16, #tpu.memory_space<vmem>>, %arg7: memref<1x128xf32, #tpu.memory_space<vmem>>, %arg8: memref<128x64xbf16, #tpu.memory_space<vmem>>, %arg9: memref<1x64xf32, #tpu.memory_space<vmem>>, %arg10: memref<1x64xbf16, #tpu.memory_space<vmem>>, %arg11: memref<1x1xf32, #tpu.memory_space<vmem>>, %arg12: memref<1x1x16xf32, #tpu.memory_space<vmem>>) attributes {dimension_semantics = [#tpu.dimension_semantics<parallel>], iteration_bounds = array<i64: 1>, scalar_prefetch = 0 : i64, scratch_operands = 0 : i64, tpu.core_type = #tpu.core_type<tc>, window_params = [{transform_indices = @transform_0, window_bounds = array<i64: 16, 184>}, {pipeline_mode = #tpu.pipeline_mode<synchronous>, transform_indices = @transform_1, window_bounds = array<i64: 184, 176>}, {pipeline_mode = #tpu.pipeline_mode<synchronous>, transform_indices = @transform_2, window_bounds = array<i64: 1, 176>}, {pipeline_mode = #tpu.pipeline_mode<synchronous>, transform_indices = @transform_3, window_bounds = array<i64: 176, 160>}, {pipeline_mode = #tpu.pipeline_mode<synchronous>, transform_indices = @transform_4, window_bounds = array<i64: 1, 160>}, {pipeline_mode = #tpu.pipeline_mode<synchronous>, transform_indices = @transform_5, window_bounds = array<i64: 160, 128>}, {pipeline_mode = #tpu.pipeline_mode<synchronous>, transform_indices = @transform_6, window_bounds = array<i64: 1, 128>}, {pipeline_mode = #tpu.pipeline_mode<synchronous>, transform_indices = @transform_7, window_bounds = array<i64: 128, 64>}, {pipeline_mode = #tpu.pipeline_mode<synchronous>, transform_indices = @transform_8, window_bounds = array<i64: 1, 64>}, {pipeline_mode = #tpu.pipeline_mode<synchronous>, transform_indices = @transform_9, window_bounds = array<i64: 1, 64>}, {pipeline_mode = #tpu.pipeline_mode<synchronous>, transform_indices = @transform_10, window_bounds = array<i64: 1, 1>}, {transform_indices = @transform_11, window_bounds = array<i64: 1, 1, 16>}]} {
    %c0 = arith.constant 0 : index
    %c0_0 = arith.constant 0 : index
    %0 = vector.load %arg1[%c0, %c0_0] : memref<16x184xbf16, #tpu.memory_space<vmem>>, vector<16x184xbf16>
    %c0_1 = arith.constant 0 : index
    %c0_2 = arith.constant 0 : index
    %1 = vector.load %arg2[%c0_1, %c0_2] : memref<184x176xbf16, #tpu.memory_space<vmem>>, vector<184x176xbf16>
    %cst = arith.constant dense<0.000000e+00> : vector<16x176xf32>
    %2 = tpu.matmul %0, %1, %cst {dimension_numbers = #tpu.dot_dimension_numbers<[1], [0], [0], [1], [0, 0, 1, 1], [], []>} : vector<16x184xbf16>, vector<184x176xbf16>, vector<16x176xf32> -> vector<16x176xf32>
    %c0_3 = arith.constant 0 : index
    %c0_4 = arith.constant 0 : index
    %3 = vector.load %arg3[%c0_3, %c0_4] : memref<1x176xf32, #tpu.memory_space<vmem>>, vector<1x176xf32>
    %4 = vector.broadcast %3 : vector<1x176xf32> to vector<16x176xf32>
    %5 = arith.addf %2, %4 : vector<16x176xf32>
    %cst_5 = arith.constant 0.000000e+00 : f32
    %6 = vector.broadcast %cst_5 : f32 to vector<16x176xf32>
    %7 = arith.maximumf %5, %6 : vector<16x176xf32>
    %8 = arith.truncf %7 : vector<16x176xf32> to vector<16x176xbf16>
    %c0_6 = arith.constant 0 : index
    %c0_7 = arith.constant 0 : index
    %9 = vector.load %arg4[%c0_6, %c0_7] : memref<176x160xbf16, #tpu.memory_space<vmem>>, vector<176x160xbf16>
    %cst_8 = arith.constant dense<0.000000e+00> : vector<16x160xf32>
    %10 = tpu.matmul %8, %9, %cst_8 {dimension_numbers = #tpu.dot_dimension_numbers<[1], [0], [0], [1], [0, 0, 1, 1], [], []>} : vector<16x176xbf16>, vector<176x160xbf16>, vector<16x160xf32> -> vector<16x160xf32>
    %c0_9 = arith.constant 0 : index
    %c0_10 = arith.constant 0 : index
    %11 = vector.load %arg5[%c0_9, %c0_10] : memref<1x160xf32, #tpu.memory_space<vmem>>, vector<1x160xf32>
    %12 = vector.broadcast %11 : vector<1x160xf32> to vector<16x160xf32>
    %13 = arith.addf %10, %12 : vector<16x160xf32>
    %cst_11 = arith.constant 0.000000e+00 : f32
    %14 = vector.broadcast %cst_11 : f32 to vector<16x160xf32>
    %15 = arith.maximumf %13, %14 : vector<16x160xf32>
    %16 = arith.truncf %15 : vector<16x160xf32> to vector<16x160xbf16>
    %c0_12 = arith.constant 0 : index
    %c0_13 = arith.constant 0 : index
    %17 = vector.load %arg6[%c0_12, %c0_13] : memref<160x128xbf16, #tpu.memory_space<vmem>>, vector<160x128xbf16>
    %cst_14 = arith.constant dense<0.000000e+00> : vector<16x128xf32>
    %18 = tpu.matmul %16, %17, %cst_14 {dimension_numbers = #tpu.dot_dimension_numbers<[1], [0], [0], [1], [0, 0, 1, 1], [], []>} : vector<16x160xbf16>, vector<160x128xbf16>, vector<16x128xf32> -> vector<16x128xf32>
    %c0_15 = arith.constant 0 : index
    %c0_16 = arith.constant 0 : index
    %19 = vector.load %arg7[%c0_15, %c0_16] : memref<1x128xf32, #tpu.memory_space<vmem>>, vector<1x128xf32>
    %20 = vector.broadcast %19 : vector<1x128xf32> to vector<16x128xf32>
    %21 = arith.addf %18, %20 : vector<16x128xf32>
    %cst_17 = arith.constant 0.000000e+00 : f32
    %22 = vector.broadcast %cst_17 : f32 to vector<16x128xf32>
    %23 = arith.maximumf %21, %22 : vector<16x128xf32>
    %24 = arith.truncf %23 : vector<16x128xf32> to vector<16x128xbf16>
    %c0_18 = arith.constant 0 : index
    %c0_19 = arith.constant 0 : index
    %25 = vector.load %arg8[%c0_18, %c0_19] : memref<128x64xbf16, #tpu.memory_space<vmem>>, vector<128x64xbf16>
    %cst_20 = arith.constant dense<0.000000e+00> : vector<16x64xf32>
    %26 = tpu.matmul %24, %25, %cst_20 {dimension_numbers = #tpu.dot_dimension_numbers<[1], [0], [0], [1], [0, 0, 1, 1], [], []>} : vector<16x128xbf16>, vector<128x64xbf16>, vector<16x64xf32> -> vector<16x64xf32>
    %c0_21 = arith.constant 0 : index
    %c0_22 = arith.constant 0 : index
    %27 = vector.load %arg9[%c0_21, %c0_22] : memref<1x64xf32, #tpu.memory_space<vmem>>, vector<1x64xf32>
    %28 = vector.broadcast %27 : vector<1x64xf32> to vector<16x64xf32>
    %29 = arith.addf %26, %28 : vector<16x64xf32>
    %cst_23 = arith.constant 0.000000e+00 : f32
    %30 = vector.broadcast %cst_23 : f32 to vector<16x64xf32>
    %31 = arith.maximumf %29, %30 : vector<16x64xf32>
    %32 = arith.truncf %31 : vector<16x64xf32> to vector<16x64xbf16>
    %c0_24 = arith.constant 0 : index
    %c0_25 = arith.constant 0 : index
    %33 = vector.load %arg10[%c0_24, %c0_25] : memref<1x64xbf16, #tpu.memory_space<vmem>>, vector<1x64xbf16>
    "tpu.trace_start"() <{level = 10 : i32, message = "ck,nk->cn"}> : () -> ()
    %cst_26 = arith.constant dense<0.000000e+00> : vector<1x16xf32>
    %34 = tpu.matmul %33, %32, %cst_26 {dimension_numbers = #tpu.dot_dimension_numbers<[1], [1], [0], [0], [0, 0, 1, 0], [], []>} : vector<1x64xbf16>, vector<16x64xbf16>, vector<1x16xf32> -> vector<1x16xf32>
    "tpu.trace_stop"() : () -> ()
    %c0_27 = arith.constant 0 : index
    %c0_28 = arith.constant 0 : index
    %35 = vector.load %arg11[%c0_27, %c0_28] : memref<1x1xf32, #tpu.memory_space<vmem>>, vector<1x1xf32>
    %36 = vector.broadcast %35 : vector<1x1xf32> to vector<1x16xf32>
    %37 = arith.addf %34, %36 : vector<1x16xf32>
    %38 = vector.shape_cast %37 : vector<1x16xf32> to vector<1x1x16xf32>
    %c0_29 = arith.constant 0 : index
    %c0_30 = arith.constant 0 : index
    %c0_31 = arith.constant 0 : index
    %39 = vector.load %arg12[%c0_29, %c0_30, %c0_31] : memref<1x1x16xf32, #tpu.memory_space<vmem>>, vector<1x1x16xf32>
    tpu.vector_store %arg12[%c0_29, %c0_30, %c0_31], %38 {strides = array<i32>} : memref<1x1x16xf32, #tpu.memory_space<vmem>>, vector<1x1x16xf32>,
    return
  }
  func.func @transform_0(%arg0: i32) -> (i32, i32) {
    %c0_i32 = arith.constant 0 : i32
    %c0_i32_0 = arith.constant 0 : i32
    return %arg0, %c0_i32 : i32, i32
  }
  func.func @transform_1(%arg0: i32) -> (i32, i32) {
    %c0_i32 = arith.constant 0 : i32
    %c0_i32_0 = arith.constant 0 : i32
    %c0_i32_1 = arith.constant 0 : i32
    return %c0_i32, %c0_i32_0 : i32, i32
  }
  func.func @transform_2(%arg0: i32) -> (i32, i32) {
    %c0_i32 = arith.constant 0 : i32
    %c0_i32_0 = arith.constant 0 : i32
    %c0_i32_1 = arith.constant 0 : i32
    return %c0_i32, %c0_i32_0 : i32, i32
  }
  func.func @transform_3(%arg0: i32) -> (i32, i32) {
    %c0_i32 = arith.constant 0 : i32
    %c0_i32_0 = arith.constant 0 : i32
    %c0_i32_1 = arith.constant 0 : i32
    return %c0_i32, %c0_i32_0 : i32, i32
  }
  func.func @transform_4(%arg0: i32) -> (i32, i32) {
    %c0_i32 = arith.constant 0 : i32
    %c0_i32_0 = arith.constant 0 : i32
    %c0_i32_1 = arith.constant 0 : i32
    return %c0_i32, %c0_i32_0 : i32, i32
  }
  func.func @transform_5(%arg0: i32) -> (i32, i32) {
    %c0_i32 = arith.constant 0 : i32
    %c0_i32_0 = arith.constant 0 : i32
    %c0_i32_1 = arith.constant 0 : i32
    return %c0_i32, %c0_i32_0 : i32, i32
  }
  func.func @transform_6(%arg0: i32) -> (i32, i32) {
    %c0_i32 = arith.constant 0 : i32
    %c0_i32_0 = arith.constant 0 : i32
    %c0_i32_1 = arith.constant 0 : i32
    return %c0_i32, %c0_i32_0 : i32, i32
  }
  func.func @transform_7(%arg0: i32) -> (i32, i32) {
    %c0_i32 = arith.constant 0 : i32
    %c0_i32_0 = arith.constant 0 : i32
    %c0_i32_1 = arith.constant 0 : i32
    return %c0_i32, %c0_i32_0 : i32, i32
  }
  func.func @transform_8(%arg0: i32) -> (i32, i32) {
    %c0_i32 = arith.constant 0 : i32
    %c0_i32_0 = arith.constant 0 : i32
    %c0_i32_1 = arith.constant 0 : i32
    return %c0_i32, %c0_i32_0 : i32, i32
  }
  func.func @transform_9(%arg0: i32) -> (i32, i32) {
    %c0_i32 = arith.constant 0 : i32
    %c0_i32_0 = arith.constant 0 : i32
    %c0_i32_1 = arith.constant 0 : i32
    return %c0_i32, %c0_i32_0 : i32, i32
  }
  func.func @transform_10(%arg0: i32) -> (i32, i32) {
    %c0_i32 = arith.constant 0 : i32
    %c0_i32_0 = arith.constant 0 : i32
    %c0_i32_1 = arith.constant 0 : i32
    return %c0_i32, %c0_i32_0 : i32, i32
  }
  func.func @transform_11(%arg0: i32) -> (i32, i32, i32) {
    %c0_i32 = arith.constant 0 : i32
    %c0_i32_0 = arith.constant 0 : i32
    %c0_i32_1 = arith.constant 0 : i32
    return %arg0, %c0_i32, %c0_i32_0 : i32, i32, i32
  }
}

</mosaic_0001>

<bundles_post_ra>
// kernel: tpu_custom_call.1
= control target key start
LH: loop header
LB: loop body
LE: loop exit
PB: predicated region body
PF: predicated region fallthrough
CT: control target
= control target key end

     0   :  { %s1316_s0 = inlined_call_operand.vmem [shape: bf16[16,184], index: 0, kind: input, shape index: {}]   ;;  %s1317_s1 = inlined_call_operand.vmem [shape: bf16[184,176], index: 1, kind: input, shape index: {}]   ;;  %s1318_s2 = inlined_call_operand.vmem [shape: f32[1,176], index: 2, kind: input, shape index: {}]   ;;  %s1319_s3 = inlined_call_operand.vmem [shape: bf16[176,160], index: 3, kind: input, shape index: {}]   ;;  %s1320_s4 = inlined_call_operand.vmem [shape: f32[1,160], index: 4, kind: input, shape index: {}]   ;;  %s1321_s5 = inlined_call_operand.vmem [shape: bf16[160,128], index: 5, kind: input, shape index: {}]   ;;  %s1322_s6 = inlined_call_operand.vmem [shape: f32[1,128], index: 6, kind: input, shape index: {}]   ;;  %s1323_s7 = inlined_call_operand.vmem [shape: bf16[128,64], index: 7, kind: input, shape index: {}]   ;;  %s1324_s8 = inlined_call_operand.vmem [shape: f32[1,64], index: 8, kind: input, shape index: {}]   ;;  %s1325_s9 = inlined_call_operand.vmem [shape: bf16[1,64], index: 9, kind: input, shape index: {}]   ;;  %s1326_s10 = inlined_call_operand.<no memory space> [shape: f32[1,1], index: 10, kind: input, shape index: {}]   ;;  %s1327_s11 = inlined_call_operand.hbm [shape: f32[1,1,16], index: 11, kind: output, shape index: {}]  }
   0x1   :  { %v16_v0 = vstv %s1326_s10 }
   0x2   :  { %17 = vst [vmem:[#allocation2] sm:$0x1] %v16_v0 }
   0x3   :  { %v899_v1 = vld [vmem:[%s1317_s1 + $0x4] ss:$8 sps:$4 sm:$0xff]   ;;  %v901_v2 = vld [vmem:[%s1317_s1] ss:$8 sps:$4 sm:$0xff]   ;;  %v902_v3 = vld [vmem:[%s1317_s1 + $0x14] ss:$8 sps:$4 sm:$0xff]  }
   0x4   :  { %214 = vmatprep.subr.bf16.mxu0 %v899_v1  ;;  %v904_v4 = vld [vmem:[%s1317_s1 + $0x10] ss:$8 sps:$4 sm:$0xff]   ;;  %v905_v5 = vld [vmem:[%s1317_s1 + $0x24] ss:$8 sps:$4 sm:$0xff]   ;;  %v907_v6 = vld [vmem:[%s1317_s1 + $0x20] ss:$8 sps:$4 sm:$0xff]  }
   0x5   :  { %215 = vmatpush1.bf16.msra.mxu0 %v901_v2  ;;  %v908_v7 = vld [vmem:[%s1317_s1 + $0x34] ss:$8 sps:$4 sm:$0xff]   ;;  %v910_v8 = vld [vmem:[%s1317_s1 + $0x30] ss:$8 sps:$4 sm:$0xff]   ;;  %v911_v9 = vld [vmem:[%s1317_s1 + $0x44] ss:$8 sps:$4 sm:$0xff]  }
   0x6   :  { %216 = vmatprep.subr.bf16.mxu0 %v902_v3  ;;  %v913_v10 = vld [vmem:[%s1317_s1 + $0x40] ss:$8 sps:$4 sm:$0xff]   ;;  %v914_v11 = vld [vmem:[%s1317_s1 + $0x54] ss:$8 sps:$4 sm:$0xff]   ;;  %vm203_vm0 = vcmask 457728   ;;  %vm207_vm1 = vcmask 1043456  }
   0x7   :  { %v936_v12 = vld [vmem:[%s1316_s0 + $0x4] ss:$8 sps:$4 sm:$0xff]   ;;  %v939_v14 = vld [vmem:[%s1319_s3] ss:$8 sps:$4 sm:$0xff]   ;;  %v916_v15 = vld [vmem:[%s1317_s1 + $0x50] ss:$8 sps:$4 sm:$0xff]  }
   0x8   :  { %v937_v13 = vld [vmem:[%s1319_s3 + $0x4] ss:$8 sps:$4 sm:$0xff]   ;;  %811 = vmatprep.mubr.msk.bf16.mxu0 %vm203_vm0, %v936_v12  ;;  %v940_v16 = vld [vmem:[%s1319_s3 + $0x14] ss:$8 sps:$4 sm:$0xff]   ;;  %v942_v18 = vld [vmem:[%s1319_s3 + $0x10] ss:$8 sps:$4 sm:$0xff]  }
   0x9   :  { %217 = vmatpush1.bf16.msra.mxu0 %v904_v4  ;;  %v917_v17 = vld [vmem:[%s1317_s1 + $0x64] ss:$8 sps:$4 sm:$0xff]   ;;  %411 = vmatprep.subr.bf16.mxu1 %v937_v13  ;;  %v919_v20 = vld [vmem:[%s1317_s1 + $0x60] ss:$8 sps:$4 sm:$0xff]   ;;  %v920_v21 = vld [vmem:[%s1317_s1 + $0x74] ss:$8 sps:$4 sm:$0xff]  }
   0xa   :  { %218 = vmatprep.subr.bf16.mxu0 %v905_v5  ;;  %412 = vmatpush1.bf16.msra.mxu1 %v939_v14  ;;  %v943_v19 = vld [vmem:[%s1319_s3 + $0x24] ss:$8 sps:$4 sm:$0xff]   ;;  %v945_v22 = vld [vmem:[%s1319_s3 + $0x20] ss:$8 sps:$4 sm:$0xff]   ;;  %v946_v23 = vld [vmem:[%s1319_s3 + $0x34] ss:$8 sps:$4 sm:$0xff]  }
   0xb   :  { %413 = vmatprep.subr.bf16.mxu1 %v940_v16  ;;  %v922_v24 = vld [vmem:[%s1317_s1 + $0x70] ss:$8 sps:$4 sm:$0xff]   ;;  %v923_v25 = vld [vmem:[%s1317_s1 + $0x84] ss:$8 sps:$4 sm:$0xff]   ;;  %v925_v28 = vld [vmem:[%s1317_s1 + $0x80] ss:$8 sps:$4 sm:$0xff]  }
   0xc   :  { %v948_v26 = vld [vmem:[%s1319_s3 + $0x30] ss:$8 sps:$4 sm:$0xff]   ;;  %v949_v27 = vld [vmem:[%s1319_s3 + $0x44] ss:$8 sps:$4 sm:$0xff]   ;;  %v926_v29 = vld [vmem:[%s1317_s1 + $0x94] ss:$8 sps:$4 sm:$0xff]  }
   0xd   :  { %219 = vmatpush1.bf16.msra.mxu0 %v907_v6  ;;  %v951_v30 = vld [vmem:[%s1319_s3 + $0x40] ss:$8 sps:$4 sm:$0xff]   ;;  %v952_v31 = vld [vmem:[%s1319_s3 + $0x54] ss:$8 sps:$4 sm:$0xff]   ;;  %v928_v32 = vld [vmem:[%s1317_s1 + $0x90] ss:$8 sps:$4 sm:$0xff]  }
   0xe   :  { %220 = vmatprep.subr.bf16.mxu0 %v908_v7  ;;  %414 = vmatpush1.bf16.msra.mxu1 %v942_v18  ;;  %v929_v33 = vld [vmem:[%s1317_s1 + $0xa4] ss:$8 sps:$4 sm:$0xff]   ;;  %v954_v34 = vld [vmem:[%s1319_s3 + $0x50] ss:$8 sps:$4 sm:$0xff]   ;;  %v931_v37 = vld [vmem:[%s1317_s1 + $0xa0] ss:$8 sps:$4 sm:$0xff]  }
   0xf   :  { %415 = vmatprep.subr.bf16.mxu1 %v943_v19  ;;  %v66_v35 = vld [vmem:[%s1317_s1 + $0xb0] sm:$0xff]  ;;  %v955_v36 = vld [vmem:[%s1319_s3 + $0x64] ss:$8 sps:$4 sm:$0xff]   ;;  %v957_v38 = vld [vmem:[%s1319_s3 + $0x60] ss:$8 sps:$4 sm:$0xff]  }
  0x10   :  { %v958_v39 = vld [vmem:[%s1319_s3 + $0x74] ss:$8 sps:$4 sm:$0xff]   ;;  %v809_v40 = vcombine.high %v66_v35, %v66_v35  ;;  %v808_v41 = vcombine.low %v66_v35, %v66_v35 }
  0x11   :  { %221 = vmatpush1.bf16.msra.mxu0 %v910_v8 }
  0x12   :  { %222 = vmatprep.subr.bf16.mxu0 %v911_v9  ;;  %416 = vmatpush1.bf16.msra.mxu1 %v945_v22 }
  0x13   :  { %417 = vmatprep.subr.bf16.mxu1 %v946_v23 }
  0x15   :  { %223 = vmatpush1.bf16.msra.mxu0 %v913_v10 }
  0x16   :  { %224 = vmatprep.subr.bf16.mxu0 %v914_v11  ;;  %418 = vmatpush1.bf16.msra.mxu1 %v948_v26 }
  0x17   :  { %419 = vmatprep.subr.bf16.mxu1 %v949_v27 }
  0x19   :  { %225 = vmatpush1.bf16.msra.mxu0 %v916_v15 }
  0x1a   :  { %226 = vmatprep.subr.bf16.mxu0 %v917_v17  ;;  %420 = vmatpush1.bf16.msra.mxu1 %v951_v30 }
  0x1b   :  { %421 = vmatprep.subr.bf16.mxu1 %v952_v31 }
  0x1d   :  { %227 = vmatpush1.bf16.msra.mxu0 %v919_v20 }
  0x1e   :  { %228 = vmatprep.subr.bf16.mxu0 %v920_v21  ;;  %422 = vmatpush1.bf16.msra.mxu1 %v954_v34 }
  0x1f   :  { %423 = vmatprep.subr.bf16.mxu1 %v955_v36 }
  0x21   :  { %229 = vmatpush1.bf16.msra.mxu0 %v922_v24 }
  0x22   :  { %230 = vmatprep.subr.bf16.mxu0 %v923_v25 }
  0x25   :  { %231 = vmatpush1.bf16.msra.mxu0 %v925_v28 }
  0x26   :  { %232 = vmatprep.subr.bf16.mxu0 %v926_v29 }
  0x29   :  { %233 = vmatpush1.bf16.msra.mxu0 %v928_v32 }
  0x2a   :  { %234 = vmatprep.subr.bf16.mxu0 %v929_v33 }
  0x2b   :  { %18 = vsyncpa [#allocation4], 0  ;;  %v209_v42 = vsel %vm207_vm1, %v808_v41, 0  ;;  %424 = vmatpush1.bf16.msra.mxu1 %v957_v38  ;;  %v960_v43 = vld [vmem:[%s1319_s3 + $0x70] ss:$8 sps:$4 sm:$0xff]   ;;  %v1012_v51 = vmov 0   ;;  %v69_v52 = vlaneseq }
  0x2c   :  { %425 = vmatprep.subr.bf16.mxu1 %v958_v39  ;;  %v961_v44 = vld [vmem:[%s1319_s3 + $0x84] ss:$8 sps:$4 sm:$0xff]   ;;  %v934_v45 = vld [vmem:[%s1316_s0] ss:$8 sps:$4 sm:$0xff]   ;;  %v964_v47 = vld [vmem:[%s1319_s3 + $0x94] ss:$8 sps:$4 sm:$0xff]   ;;  %898 = vset.pattern.permute.xlu0 %v1012_v51 }
  0x2d   :  { %235 = vmatpush1.bf16.msra.mxu0 %v931_v37  ;;  %v963_v46 = vld [vmem:[%s1319_s3 + $0x80] ss:$8 sps:$4 sm:$0xff]   ;;  %v966_v48 = vld [vmem:[%s1319_s3 + $0x90] ss:$8 sps:$4 sm:$0xff]   ;;  %v967_v49 = vld [vmem:[%s1319_s3 + $0xa4] ss:$8 sps:$4 sm:$0xff]  }
  0x2e   :  { %810 = vmatprep.subr.msk.bf16.mxu0 %vm207_vm1, %v809_v40  ;;  %v969_v50 = vld [vmem:[%s1319_s3 + $0xa0] ss:$8 sps:$4 sm:$0xff]   ;;  %v1222_v53 = vshrl.u32 %v69_v52, 7  ;;  %vm407_vm2 = vcmask 392192   ;;  %v972_v11 = vld [vmem:[%s1321_s5 + $0x10] sm:$0xff]   ;;  %v973_v12 = vld [vmem:[%s1321_s5 + $0x18] sm:$0xff]  }
  0x2f   :  { %426 = vmatpush1.bf16.msra.mxu1 %v960_v43  ;;  %v67_v55 = vld [vmem:[%s1318_s2] sm:$0x3]  ;;  %v971_v10 = vld [vmem:[%s1321_s5 + $0x8] sm:$0xff]   ;;  %v976_v15 = vld [vmem:[%s1321_s5 + $0x30] sm:$0xff]   ;;  %v1013_v20 = vmov 0.0   ;;  %vm547_vm3 = vcmask 261120  }
  0x30   :  { %427 = vmatprep.subr.bf16.mxu1 %v961_v44  ;;  %v1225_v54 = vsub.s32 0, %v1222_v53  ;;  %v75_v56 = vsub.s32 1, %v1222_v53  ;;  %v970_v9 = vld [vmem:[%s1321_s5] sm:$0xff]   ;;  %v975_v14 = vld [vmem:[%s1321_s5 + $0x28] sm:$0xff]   ;;  %v977_v16 = vld [vmem:[%s1321_s5 + $0x38] sm:$0xff]   ;;  %vm1014_vm4 = vmmov 0  }
  0x31   :  { %237 = vmatpush1.bf16.msra.mxu0 %v209_v42  ;;  %v974_v13 = vld [vmem:[%s1321_s5 + $0x20] sm:$0xff]   ;;  %v979_v18 = vld [vmem:[%s1321_s5 + $0x48] sm:$0xff]   ;;  %v982_v22 = vld [vmem:[%s1323_s7 + $0x10] sm:$0xff]   ;;  %vm721_vm5 = vcmask 523264   ;;  %vm768_vm6 = vcmask 122880  }
  0x32   :  { %v72_v57 = vrot.slane %v67_v55, %v1225_v54  ;;  %v76_v58 = vrot.slane %v67_v55, %v75_v56  ;;  %v978_v17 = vld [vmem:[%s1321_s5 + $0x40] sm:$0xff]   ;;  %868 = vmatprep.subr.bf16.mxu0 %v1013_v20  ;;  %v981_v21 = vld [vmem:[%s1323_s7 + $0x8] sm:$0xff]   ;;  %v983_v23 = vld [vmem:[%s1323_s7 + $0x18] sm:$0xff]  }
  0x33   :  { %428 = vmatpush1.bf16.msra.mxu1 %v963_v46  ;;  %v980_v19 = vld [vmem:[%s1323_s7] sm:$0xff]   ;;  %v985_v25 = vld [vmem:[%s1323_s7 + $0x28] sm:$0xff]   ;;  %v986_v43 = vld [vmem:[%s1323_s7 + $0x30] sm:$0xff]  }
  0x34   :  { %247 = vmatmul.mubr.bf16.vlgmr.msra.gmra.mrb[0].mxu0 %v934_v45  ;;  %429 = vmatprep.subr.bf16.mxu1 %v964_v47  ;;  %v984_v24 = vld [vmem:[%s1323_s7 + $0x20] sm:$0xff]   ;;  %v987_v44 = vld [vmem:[%s1323_s7 + $0x38] sm:$0xff]  }
  0x35   :  { %869 = vmatpush3.bf16.msra.mxu0 %v980_v19  ;;  %v285_v26 = vld [vmem:[%s1320_s4] sm:$0x3]  ;;  %884 = vmatprep.mubr.msk.bf16.mxu0 %vm1014_vm4, %v1013_v20 }
  0x36   :  { %870 = vmatprep.subr.bf16.mxu0 %v1013_v20  ;;  %v290_v27 = vrot.slane %v285_v26, %v1225_v54  ;;  %v294_v28 = vrot.slane %v285_v26, %v75_v56  ;;  %v835_v45 = vld [vmem:[%s1322_s6] ss:$0 sm:$0xff] }
  0x37   :  { %430 = vmatpush1.bf16.msra.mxu1 %v966_v48  ;;  %v711_v56 = vld [vmem:[#allocation2] sm:$0x1] }
  0x38   :  { %431 = vmatprep.subr.bf16.mxu1 %v967_v49  ;;  %714 = vperm.xlu0 %898, %v711_v56  }
  0x39   :  { %871 = vmatpush3.bf16.msra.mxu0 %v981_v21 }
  0x3a   :  { %872 = vmatprep.subr.bf16.mxu0 %v1013_v20 }
  0x3b   :  { %432 = vmatpush1.bf16.msra.mxu1 %v969_v50 }
  0x3c   :  { %551 = vmatprep.subr.bf16.mxu1 %v1012_v51 }
  0x3d   :  { %873 = vmatpush3.bf16.msra.mxu0 %v982_v22 }
  0x3e   :  { %874 = vmatprep.subr.bf16.mxu0 %v1013_v20 }
  0x41   :  { %875 = vmatpush3.bf16.msra.mxu0 %v983_v23 }
  0x42   :  { %876 = vmatprep.subr.bf16.mxu0 %v1013_v20 }
  0x45   :  { %877 = vmatpush3.bf16.msra.mxu0 %v984_v24 }
  0x46   :  { %878 = vmatprep.subr.bf16.mxu0 %v1013_v20 }
  0x49   :  { %879 = vmatpush3.bf16.msra.mxu0 %v985_v25 }
  0x4a   :  { %880 = vmatprep.subr.bf16.mxu0 %v1013_v20 }
  0x4d   :  { %881 = vmatpush3.bf16.msra.mxu0 %v986_v43 }
  0x4e   :  { %882 = vmatprep.subr.bf16.mxu0 %v1013_v20 }
  0x51   :  { %883 = vmatpush3.bf16.msra.mxu0 %v987_v44 }
  0x52   :  { %888 = vmatprep.subr.bf16.mxu0 %v1013_v20 }
 0x107   :  { %v248_v59 = vpop.f32.mrb[0].mxu0 }
 0x108   :  { %v249_v60 = vadd.f32 %v248_v59, %v72_v57  ;;  %v250_v61 = vpop.f32.mrb[1].mxu0 }
 0x109   :  { %v251_v62 = vadd.f32 %v250_v61, %v76_v58  ;;  %v252_v63 = vpop.f32.mrb[2].mxu0 }
 0x10a   :  { %v253_v0 = vadd.f32 %v252_v63, %v72_v57  ;;  %v254_v1 = vpop.f32.mrb[3].mxu0  ;;  %v257_v3 = vmax.f32 %v249_v60, 0.0  ;;  %v847_v57 = vld [vmem:[%s1324_s8] ss:$0 sm:$0xff]  ;;  %s1015_s8 = smov [#allocation3]  }
 0x10b   :  { %v255_v2 = vadd.f32 %v254_v1, %v76_v58  ;;  %v258_v5 = vmax.f32 %v251_v62, 0.0  ;;  %s776_s26 = sshll.u32 %s1015_s8, 4  ;;  %s777_s26 = int_to_ptr.vmem [resolvable:$true] %s776_s26 }
 0x10c   :  { %v259_v4 = vmax.f32 %v253_v0, 0.0  ;;  %s988_s10 = scalar_lea.vmem %s777_s26, 16  ;;  %s992_s0 = scalar_lea.vmem %s777_s26, 32 }
 0x10d   :  { %v260_v6 = vmax.f32 %v255_v2, 0.0  ;;  %p989_p0 = scmp.ne.s32.totalorder %s777_s26, %s988_s10  ;;  %p993_p1 = scmp.lt.s32.totalorder %s777_s26, %s777_s26 }
 0x10e   :  { %v261_v7 = vpack.c.bf16 %v259_v4, %v257_v3  ;;  %v710_v4 = vld [vmem:[%s1325_s9] sm:$0x1]  ;;  %p994_p2 = scmp.lt.s32.totalorder %s992_s0, %s988_s10 }
 0x10f   :  { %v262_v8 = vpack.c.bf16 %v260_v6, %v258_v5  ;;  %v715_v5 = vpop.permute.xlu0 %714 }
 0x110   :  { %v720_v6 = vrot.slane %v715_v5, %v1225_v54  ;;  %p995_p3 = por %p994_p2, %p993_p1 }
 0x111   :  { %834 = vmatprep.mubr.msk.bf16.mxu1 %vm407_vm2, %v262_v8 }
 0x112   :  { %444 = vmatmul.mubr.bf16.vlgmr.msra.gmra.mrb[0].mxu1 %v261_v7  ;;  %p996_p4 = pnand %p995_p3, %p989_p0 }
 0x113   :  { %552 = vmatpush1.bf16.msra.mxu1 %v970_v9 }
 0x114   :  { %553 = vmatprep.subr.bf16.mxu1 %v1012_v51 }
 0x117   :  { %554 = vmatpush1.bf16.msra.mxu1 %v971_v10 }
 0x118   :  { %555 = vmatprep.subr.bf16.mxu1 %v1012_v51 }
 0x11b   :  { %556 = vmatpush1.bf16.msra.mxu1 %v972_v11 }
 0x11c   :  { %557 = vmatprep.subr.bf16.mxu1 %v1012_v51 }
 0x11f   :  { %558 = vmatpush1.bf16.msra.mxu1 %v973_v12 }
 0x120   :  { %559 = vmatprep.subr.bf16.mxu1 %v1012_v51 }
 0x123   :  { %560 = vmatpush1.bf16.msra.mxu1 %v974_v13 }
 0x124   :  { %561 = vmatprep.subr.bf16.mxu1 %v1012_v51 }
 0x127   :  { %562 = vmatpush1.bf16.msra.mxu1 %v975_v14 }
 0x128   :  { %563 = vmatprep.subr.bf16.mxu1 %v1012_v51 }
 0x12b   :  { %564 = vmatpush1.bf16.msra.mxu1 %v976_v15 }
 0x12c   :  { %565 = vmatprep.subr.bf16.mxu1 %v1012_v51 }
 0x12f   :  { %566 = vmatpush1.bf16.msra.mxu1 %v977_v16 }
 0x130   :  { %567 = vmatprep.subr.bf16.mxu1 %v1012_v51 }
 0x133   :  { %568 = vmatpush1.bf16.msra.mxu1 %v978_v17 }
 0x134   :  { %569 = vmatprep.subr.bf16.mxu1 %v1012_v51 }
 0x137   :  { %570 = vmatpush1.bf16.msra.mxu1 %v979_v18 }
 0x1e5   :  { %v445_v29 = vpop.f32.mrb[0].mxu1 }
 0x1e6   :  { %v446_v30 = vadd.f32 %v445_v29, %v290_v27  ;;  %v447_v31 = vpop.f32.mrb[1].mxu1 }
 0x1e7   :  { %v448_v32 = vadd.f32 %v447_v31, %v294_v28  ;;  %v449_v33 = vpop.f32.mrb[2].mxu1 }
 0x1e8   :  { %v450_v34 = vadd.f32 %v449_v33, %v290_v27  ;;  %v451_v35 = vpop.f32.mrb[3].mxu1  ;;  %v454_v37 = vmax.f32 %v446_v30, 0.0 }
 0x1e9   :  { %v452_v36 = vadd.f32 %v451_v35, %v294_v28  ;;  %v455_v39 = vmax.f32 %v448_v32, 0.0 }
 0x1ea   :  { %v456_v38 = vmax.f32 %v450_v34, 0.0 }
 0x1eb   :  { %v457_v40 = vmax.f32 %v452_v36, 0.0 }
 0x1ec   :  { %v458_v41 = vpack.c.bf16 %v456_v38, %v454_v37 }
 0x1ed   :  { %v459_v42 = vpack.c.bf16 %v457_v40, %v455_v39 }
 0x1ef   :  { %846 = vmatprep.mubr.msk.bf16.mxu1 %vm547_vm3, %v459_v42 }
 0x1f0   :  { %584 = vmatmul.mubr.bf16.vlgmr.msra.gmra.mrb[4].mxu1 %v458_v41 }
 0x2c3   :  { %v585_v46 = vpop.f32.mrb[4].mxu1 }
 0x2c4   :  { %v586_v47 = vadd.f32 %v835_v45, %v585_v46  ;;  %v587_v48 = vpop.f32.mrb[5].mxu1 }
 0x2c5   :  { %v588_v49 = vpop.f32.mrb[6].mxu1 }
 0x2c6   :  { %v589_v50 = vadd.f32 %v835_v45, %v588_v49  ;;  %v590_v51 = vpop.f32.mrb[7].mxu1  ;;  %v592_v52 = vmax.f32 %v586_v47, 0.0 }
 0x2c8   :  { %v593_v53 = vmax.f32 %v589_v50, 0.0 }
 0x2ca   :  { %v594_v55 = vpack.c.bf16 %v593_v53, %v592_v52 }
 0x2cc   :  { %885 = vmatmul.mubr.bf16.vlgmr.msra.gmra.mrb[4].mxu0 %v594_v55 }
 0x2cd   :  { %890 = vmatprep.mubr.msk.bf16.mxu0 %vm1014_vm4, %v1013_v20 }
 0x39f   :  { %v700_v58 = vpop.f32.mrb[4].mxu0 }
 0x3a0   :  { %v701_v59 = vadd.f32 %v847_v57, %v700_v58  ;;  %v886_v60 = vpop.f32.mrb[5].mxu0 }
 0x3a1   :  { %v703_v61 = vpop.f32.mrb[6].mxu0 }
 0x3a2   :  { %v704_v62 = vadd.f32 %v847_v57, %v703_v61  ;;  %v887_v63 = vpop.f32.mrb[7].mxu0  ;;  %v707_v0 = vmax.f32 %v701_v59, 0.0 }
 0x3a4   :  { %v708_v1 = vmax.f32 %v704_v62, 0.0 }
 0x3a6   :  { %v709_v2 = vpack.c.bf16 %v708_v1, %v707_v0 }
 0x3a8   :  { %v726_v3 = vsel %vm721_vm5, %v709_v2, 0 }
 0x3a9   :  { %889 = vmatpush3.bf16.xpose.msra.mxu0 %v726_v3 }
 0x3b0   :  { %891 = vmatmul.mubr.msk.bf16.vlgmr.msra.gmra.mrb[8].mxu0 %vm721_vm5, %v710_v4 }
 0x483   :  { %v762_v7 = vpop.f32.mrb[8].mxu0 }
 0x484   :  { %v763_v8 = vadd.f32 %v762_v7, %v720_v6  ;;  %v892_v9 = vpop.f32.mrb[9].mxu0 }
 0x485   :  { %v765_v10 = vpop.f32.mrb[10].mxu0 }
 0x486   :  { %v893_v11 = vpop.f32.mrb[11].mxu0  ;;  %769 = vst.msk [vmem:[#allocation3] sm:$0x1] %vm768_vm6, %v763_v8 }
 0x487   :  { %999 = shalt.err (!%p996_p4)
}
 0x488   :  { %s1000_s28 = scalar_lea.hbm %s1327_s11, 16 }
 0x489   :  { %p1001_p5 = scmp.ne.s32.totalorder %s1327_s11, %s1000_s28  ;;  %p1004_p6 = scmp.lt.u32.totalorder %s1000_s28, %s1327_s11 }
 0x48b   :  { %p1006_p7 = pnand %p1004_p6, %p1001_p5 }
 0x48d   :  { %1009 = shalt.err (!%p1006_p7)
}
 0x48e   :  { %779 = dma.vmem_to_hbm [thread:$0]  %s777_s26, 16, %s1327_s11, [#allocation4]  }
 0x48f   :  { %1010 = dma.done.wait [#allocation4], 16  }
 0x490   :  { %1011 = vsyncadd [#allocation4], 4294967280 }
 0x491   :  { %783 = vsyncpa [#allocation4], 1 }

</bundles_post_ra>
